<compile_context>
chip_gen: v7x
topology: tpu7x:2x2x1
jax: 0.10.0
libtpu: 0.0.40
codegen_flags: <defaults>
</compile_context>

<pallas_src>
import functools
import math

import jax
import jax.numpy as jnp
from jax import lax
from jax.experimental import pallas as pl
from jax.experimental.pallas import tpu as pltpu


def _conv2_kernel(x_ref, w_ref, bias_ref, o_ref, *, taps, s_out):
    """Fused (3x3 + 1x1) conv + BatchNorm + SiLU for a block of images.

    x_ref:    (Nb, C1p, S)      bf16, zero-padded + spatially flattened input (S = Hp*Wp)
    w_ref:    (C2b, 9*C1p)      bf16, im2col-ordered weights with BN scale folded in
    bias_ref: (C2b, 1)          f32, folded BatchNorm bias
    o_ref:    (Nb, C2b, s_out)  output, s_out = H*Wp (lane-dense)
    """
    w = w_ref[...]                       # (C2b, K9) bf16, stays resident across the grid
    b = bias_ref[...]                    # (C2b, 1)  f32
    nb = x_ref.shape[0]
    for n in range(nb):                  # statically unrolled over images in this block
        # Build the (9*C1p, s_out) im2col matrix once: 9 lane-shifted windows stacked on
        # the sublane axis (each window has C1p rows, a multiple of 8 -> aligned concat).
        x = x_ref[n].astype(jnp.float32)                       # layout ops kept in f32
        xk = jnp.concatenate([x[:, d:d + s_out] for d in taps], axis=0)
        # Single deep MXU contraction (K = 9*C1p), f32 accumulation.
        acc = jnp.dot(w, xk.astype(jnp.bfloat16), preferred_element_type=jnp.float32)
        y = acc + b                                            # BN scale already in w
        y = y * pl.reciprocal(1.0 + jnp.exp(-y), approx=True)  # SiLU: exp + rcp on EUP
        o_ref[n] = y.astype(o_ref.dtype)


def _pad_to(v, m):
    return ((v + m - 1) // m) * m


@jax.jit
def conv2_forward(x, w3, w1, gamma, beta, running_mean, running_var, eps=1e-5):
    """act(bn(conv3x3(x) + conv1x1(x))) for NCHW input; k=3, s=1, p=1, g=1, d=1."""
    N, C1, H, W = x.shape
    C2 = w3.shape[0]
    C1p = _pad_to(C1, 8)
    C2p = _pad_to(C2, 8)

    # Padded width: smallest Wp >= W+2 giving a lane-dense output (H*Wp % 128 == 0),
    # unless that over-pads badly; then fall back to a multiple of 8.
    need = W + 2
    g = 128 // math.gcd(H, 128)
    wp128 = _pad_to(need, g)
    wp8 = _pad_to(need, 8)
    Wp = wp128 if wp128 <= 2 * wp8 else wp8
    Hp = H + 3            # two bottom pad rows keep the furthest tap window in-bounds
    S = Hp * Wp
    s_out = H * Wp

    # TODO(synk): the pad/reshape here and the slice at the end are extra whole-tensor HBM
    # passes; in a multi-layer network keep the padded (N, C, H*Wp) layout between layers
    # (re-zeroing the discarded pad columns) or DMA-pad inside the kernel.
    xp = jnp.pad(x, ((0, 0), (0, C1p - C1), (1, Hp - H - 1), (1, Wp - W - 1)))
    xf = xp.reshape(N, C1p, S).astype(jnp.bfloat16)

    # Fold 1x1 branch into the 3x3 center tap, fold BN scale into the weights, and lay the
    # taps out in im2col order: K index = tap*C1p + c1.
    inv_std = lax.rsqrt(running_var.astype(jnp.float32) + eps)
    scale = (gamma * inv_std).astype(jnp.float32)                    # (C2,)
    bias = (beta - running_mean * scale).astype(jnp.float32)         # (C2,)
    wf = w3.at[:, :, 1, 1].add(w1[:, :, 0, 0]) * scale[:, None, None, None]
    wk = jnp.transpose(wf, (0, 2, 3, 1)).reshape(C2, 9, C1)          # (C2, tap, C1)
    wk = jnp.pad(wk, ((0, C2p - C2), (0, 0), (0, C1p - C1)))
    wk = wk.reshape(C2p, 9 * C1p).astype(jnp.bfloat16)
    biasp = jnp.pad(bias, (0, C2p - C2)).reshape(C2p, 1)

    taps = tuple(dy * Wp + dx for dy in range(3) for dx in range(3))
    K9 = 9 * C1p

    # Block sizes: full-width C2 block up to 128 rows (bounds accumulator vregs; gives v7x
    # a second parallel axis once C2 is large); as many images per step as fit a ~24 MiB
    # double-buffered budget (amortizes per-grid-step pipeline overhead, still safe on
    # v7x's 64 MiB VMEM and the v5e scoped default once raised).
    c2b = max(d for d in range(8, min(C2p, 128) + 1, 8) if C2p % d == 0)
    per_img = C1p * S * 2 + c2b * s_out * 4
    nb = 1
    for d in range(N, 0, -1):
        if N % d == 0 and 2 * d * per_img <= 24 * 1024 * 1024:
            nb = d
            break

    out_flat = pl.pallas_call(
        functools.partial(_conv2_kernel, taps=taps, s_out=s_out),
        out_shape=jax.ShapeDtypeStruct((N, C2p, s_out), x.dtype),
        grid=(N // nb, C2p // c2b),
        in_specs=[
            pl.BlockSpec((nb, C1p, S), lambda n, c: (n, 0, 0)),
            pl.BlockSpec((c2b, K9), lambda n, c: (c, 0)),
            pl.BlockSpec((c2b, 1), lambda n, c: (c, 0)),
        ],
        out_specs=pl.BlockSpec((nb, c2b, s_out), lambda n, c: (n, c, 0)),
        compiler_params=pltpu.CompilerParams(
            dimension_semantics=("parallel", "parallel"),
            vmem_limit_bytes=64 * 1024 * 1024,
        ),
    )(xf, wk, biasp)

    # (N, C2p, H*Wp) -> NCHW, dropping channel/width padding (pad columns hold garbage
    # from wrapped tap reads and are discarded here).
    return out_flat.reshape(N, C2p, H, Wp)[:, :C2, :, :W]


class Conv2:
    """JAX/Pallas port of ultralytics Conv2 (forward pass; inference-mode BN, SiLU act)."""

    def __init__(self, c1, c2, k=3, s=1, p=None, g=1, d=1, act=True, *, key):
        if k != 3 or s != 1 or g != 1 or d != 1 or act is not True:
            # TODO(synk): general k/s/groups/dilation and custom activations not implemented.
            raise NotImplementedError("Pallas Conv2 kernel supports k=3, s=1, g=1, d=1, act=SiLU")
        kw3, kw1, kg, kb, km, kv = jax.random.split(key, 6)
        self.w3 = 0.1 * jax.random.normal(kw3, (c2, c1, 3, 3), jnp.float32)   # conv (3x3)
        self.w1 = 0.1 * jax.random.normal(kw1, (c2, c1, 1, 1), jnp.float32)   # cv2  (1x1)
        # BatchNorm2d affine params + running stats (inference mode).
        self.gamma = jax.random.uniform(kg, (c2,), jnp.float32, 0.5, 1.5)
        self.beta = 0.1 * jax.random.normal(kb, (c2,), jnp.float32)
        self.running_mean = 0.1 * jax.random.normal(km, (c2,), jnp.float32)
        self.running_var = jax.random.uniform(kv, (c2,), jnp.float32, 0.5, 1.5)
        self.eps = 1e-5

    def __call__(self, x):
        return conv2_forward(x, self.w3, self.w1, self.gamma, self.beta,
                             self.running_mean, self.running_var, self.eps)


def _conv2_reference(x, w3, w1, gamma, beta, mean, var, eps=1e-5):
    """Pure-JAX reference: conv3x3(x) + conv1x1(x), BatchNorm (eval), SiLU."""
    y3 = lax.conv_general_dilated(x, w3, (1, 1), ((1, 1), (1, 1)),
                                  dimension_numbers=("NCHW", "OIHW", "NCHW"))
    y1 = lax.conv_general_dilated(x, w1, (1, 1), ((0, 0), (0, 0)),
                                  dimension_numbers=("NCHW", "OIHW", "NCHW"))
    y = y3 + y1
    inv_std = 1.0 / jnp.sqrt(var + eps)
    y = y * (gamma * inv_std).reshape(1, -1, 1, 1) + (beta - mean * gamma * inv_std).reshape(1, -1, 1, 1)
    return y * jax.nn.sigmoid(y)


if __name__ == "__main__":
    key = jax.random.PRNGKey(0)
    kx, kp = jax.random.split(key)

    N, C1, C2, H, W = 2, 4, 8, 16, 16
    x = jax.random.normal(kx, (N, C1, H, W), dtype=jnp.float32)

    module = Conv2(C1, C2, key=kp)
    out = module(x)
    jax.block_until_ready(out)

    ref = _conv2_reference(x, module.w3, module.w1, module.gamma, module.beta,
                           module.running_mean, module.running_var, module.eps)

    assert out.shape == (N, C2, H, W) and out.dtype == x.dtype
    max_err = float(jnp.max(jnp.abs(out - ref)))
    # bf16 MXU inputs (vs. f32 reference): expect ~1e-2-level absolute error.
    assert max_err < 5e-2, f"max abs error {max_err}"
    print("KERNEL_OK")
</pallas_src>

<mosaic_0001>
module attributes {stable_mosaic.version = 11 : i64} {
  func.func @_conv2_kernel(%arg0: i32, %arg1: i32, %arg2: memref<2x8x456xbf16, #tpu.memory_space<vmem>>, %arg3: memref<8x72xbf16, #tpu.memory_space<vmem>>, %arg4: memref<8x1xf32, #tpu.memory_space<vmem>>, %arg5: memref<2x8x384xf32, #tpu.memory_space<vmem>>) attributes {dimension_semantics = [#tpu.dimension_semantics<parallel>, #tpu.dimension_semantics<parallel>], iteration_bounds = array<i64: 1, 1>, scalar_prefetch = 0 : i64, scratch_operands = 0 : i64, tpu.core_type = #tpu.core_type<tc>, window_params = [{transform_indices = @transform_0, window_bounds = array<i64: 2, 8, 456>}, {transform_indices = @transform_1, window_bounds = array<i64: 8, 72>}, {transform_indices = @transform_2, window_bounds = array<i64: 8, 1>}, {transform_indices = @transform_3, window_bounds = array<i64: 2, 8, 384>}]} {
    %c0 = arith.constant 0 : index
    %c0_0 = arith.constant 0 : index
    %0 = vector.load %arg3[%c0, %c0_0] : memref<8x72xbf16, #tpu.memory_space<vmem>>, vector<8x72xbf16>
    %c0_1 = arith.constant 0 : index
    %c0_2 = arith.constant 0 : index
    %1 = vector.load %arg4[%c0_1, %c0_2] : memref<8x1xf32, #tpu.memory_space<vmem>>, vector<8x1xf32>
    %c0_3 = arith.constant 0 : index
    %c0_4 = arith.constant 0 : index
    %c0_5 = arith.constant 0 : index
    %2 = vector.load %arg2[%c0_3, %c0_4, %c0_5] : memref<2x8x456xbf16, #tpu.memory_space<vmem>>, vector<1x8x456xbf16>
    %3 = vector.shape_cast %2 : vector<1x8x456xbf16> to vector<8x456xbf16>
    %4 = arith.extf %3 : vector<8x456xbf16> to vector<8x456xf32>
    %5 = vector.extract_strided_slice %4 {offsets = [0, 0], sizes = [8, 384], strides = [1, 1]} : vector<8x456xf32> to vector<8x384xf32>
    %6 = vector.extract_strided_slice %4 {offsets = [0, 1], sizes = [8, 384], strides = [1, 1]} : vector<8x456xf32> to vector<8x384xf32>
    %7 = vector.extract_strided_slice %4 {offsets = [0, 2], sizes = [8, 384], strides = [1, 1]} : vector<8x456xf32> to vector<8x384xf32>
    %8 = vector.extract_strided_slice %4 {offsets = [0, 24], sizes = [8, 384], strides = [1, 1]} : vector<8x456xf32> to vector<8x384xf32>
    %9 = vector.extract_strided_slice %4 {offsets = [0, 25], sizes = [8, 384], strides = [1, 1]} : vector<8x456xf32> to vector<8x384xf32>
    %10 = vector.extract_strided_slice %4 {offsets = [0, 26], sizes = [8, 384], strides = [1, 1]} : vector<8x456xf32> to vector<8x384xf32>
    %11 = vector.extract_strided_slice %4 {offsets = [0, 48], sizes = [8, 384], strides = [1, 1]} : vector<8x456xf32> to vector<8x384xf32>
    %12 = vector.extract_strided_slice %4 {offsets = [0, 49], sizes = [8, 384], strides = [1, 1]} : vector<8x456xf32> to vector<8x384xf32>
    %13 = vector.extract_strided_slice %4 {offsets = [0, 50], sizes = [8, 384], strides = [1, 1]} : vector<8x456xf32> to vector<8x384xf32>
    %14 = tpu.concatenate %5, %6, %7, %8, %9, %10, %11, %12, %13 in 0 : vector<8x384xf32>, vector<8x384xf32>, vector<8x384xf32>, vector<8x384xf32>, vector<8x384xf32>, vector<8x384xf32>, vector<8x384xf32>, vector<8x384xf32>, vector<8x384xf32> -> vector<72x384xf32>
    %15 = arith.truncf %14 : vector<72x384xf32> to vector<72x384xbf16>
    %cst = arith.constant dense<0.000000e+00> : vector<8x384xf32>
    %16 = tpu.matmul %0, %15, %cst {dimension_numbers = #tpu.dot_dimension_numbers<[1], [0], [0], [1], [0, 0, 1, 1], [], []>} : vector<8x72xbf16>, vector<72x384xbf16>, vector<8x384xf32> -> vector<8x384xf32>
    %17 = vector.broadcast %1 : vector<8x1xf32> to vector<8x384xf32>
    %18 = arith.addf %16, %17 : vector<8x384xf32>
    %cst_6 = arith.constant 0.000000e+00 : f32
    %19 = vector.broadcast %cst_6 : f32 to vector<8x384xf32>
    %20 = arith.subf %19, %18 : vector<8x384xf32>
    %21 = math.exp %20 : vector<8x384xf32>
    %cst_7 = arith.constant 1.000000e+00 : f32
    %22 = vector.broadcast %cst_7 : f32 to vector<8x384xf32>
    %23 = arith.addf %22, %21 : vector<8x384xf32>
    %24 = tpu.reciprocal %23 {approx = true} : vector<8x384xf32> -> vector<8x384xf32>
    %25 = arith.mulf %18, %24 : vector<8x384xf32>
    %c0_8 = arith.constant 0 : index
    %c0_9 = arith.constant 0 : index
    %c0_10 = arith.constant 0 : index
    %26 = vector.load %arg5[%c0_8, %c0_9, %c0_10] : memref<2x8x384xf32, #tpu.memory_space<vmem>>, vector<1x8x384xf32>
    %27 = vector.shape_cast %26 : vector<1x8x384xf32> to vector<8x384xf32>
    %28 = vector.shape_cast %25 : vector<8x384xf32> to vector<1x8x384xf32>
    tpu.vector_store %arg5[%c0_8, %c0_9, %c0_10], %28 {strides = array<i32>} : memref<2x8x384xf32, #tpu.memory_space<vmem>>, vector<1x8x384xf32>,
    %c1 = arith.constant 1 : index
    %c0_11 = arith.constant 0 : index
    %c0_12 = arith.constant 0 : index
    %29 = vector.load %arg2[%c1, %c0_11, %c0_12] : memref<2x8x456xbf16, #tpu.memory_space<vmem>>, vector<1x8x456xbf16>
    %30 = vector.shape_cast %29 : vector<1x8x456xbf16> to vector<8x456xbf16>
    %31 = arith.extf %30 : vector<8x456xbf16> to vector<8x456xf32>
    %32 = vector.extract_strided_slice %31 {offsets = [0, 0], sizes = [8, 384], strides = [1, 1]} : vector<8x456xf32> to vector<8x384xf32>
    %33 = vector.extract_strided_slice %31 {offsets = [0, 1], sizes = [8, 384], strides = [1, 1]} : vector<8x456xf32> to vector<8x384xf32>
    %34 = vector.extract_strided_slice %31 {offsets = [0, 2], sizes = [8, 384], strides = [1, 1]} : vector<8x456xf32> to vector<8x384xf32>
    %35 = vector.extract_strided_slice %31 {offsets = [0, 24], sizes = [8, 384], strides = [1, 1]} : vector<8x456xf32> to vector<8x384xf32>
    %36 = vector.extract_strided_slice %31 {offsets = [0, 25], sizes = [8, 384], strides = [1, 1]} : vector<8x456xf32> to vector<8x384xf32>
    %37 = vector.extract_strided_slice %31 {offsets = [0, 26], sizes = [8, 384], strides = [1, 1]} : vector<8x456xf32> to vector<8x384xf32>
    %38 = vector.extract_strided_slice %31 {offsets = [0, 48], sizes = [8, 384], strides = [1, 1]} : vector<8x456xf32> to vector<8x384xf32>
    %39 = vector.extract_strided_slice %31 {offsets = [0, 49], sizes = [8, 384], strides = [1, 1]} : vector<8x456xf32> to vector<8x384xf32>
    %40 = vector.extract_strided_slice %31 {offsets = [0, 50], sizes = [8, 384], strides = [1, 1]} : vector<8x456xf32> to vector<8x384xf32>
    %41 = tpu.concatenate %32, %33, %34, %35, %36, %37, %38, %39, %40 in 0 : vector<8x384xf32>, vector<8x384xf32>, vector<8x384xf32>, vector<8x384xf32>, vector<8x384xf32>, vector<8x384xf32>, vector<8x384xf32>, vector<8x384xf32>, vector<8x384xf32> -> vector<72x384xf32>
    %42 = arith.truncf %41 : vector<72x384xf32> to vector<72x384xbf16>
    %cst_13 = arith.constant dense<0.000000e+00> : vector<8x384xf32>
    %43 = tpu.matmul %0, %42, %cst_13 {dimension_numbers = #tpu.dot_dimension_numbers<[1], [0], [0], [1], [0, 0, 1, 1], [], []>} : vector<8x72xbf16>, vector<72x384xbf16>, vector<8x384xf32> -> vector<8x384xf32>
    %44 = vector.broadcast %1 : vector<8x1xf32> to vector<8x384xf32>
    %45 = arith.addf %43, %44 : vector<8x384xf32>
    %cst_14 = arith.constant 0.000000e+00 : f32
    %46 = vector.broadcast %cst_14 : f32 to vector<8x384xf32>
    %47 = arith.subf %46, %45 : vector<8x384xf32>
    %48 = math.exp %47 : vector<8x384xf32>
    %cst_15 = arith.constant 1.000000e+00 : f32
    %49 = vector.broadcast %cst_15 : f32 to vector<8x384xf32>
    %50 = arith.addf %49, %48 : vector<8x384xf32>
    %51 = tpu.reciprocal %50 {approx = true} : vector<8x384xf32> -> vector<8x384xf32>
    %52 = arith.mulf %45, %51 : vector<8x384xf32>
    %c1_16 = arith.constant 1 : index
    %c0_17 = arith.constant 0 : index
    %c0_18 = arith.constant 0 : index
    %53 = vector.load %arg5[%c1_16, %c0_17, %c0_18] : memref<2x8x384xf32, #tpu.memory_space<vmem>>, vector<1x8x384xf32>
    %54 = vector.shape_cast %53 : vector<1x8x384xf32> to vector<8x384xf32>
    %55 = vector.shape_cast %52 : vector<8x384xf32> to vector<1x8x384xf32>
    tpu.vector_store %arg5[%c1_16, %c0_17, %c0_18], %55 {strides = array<i32>} : memref<2x8x384xf32, #tpu.memory_space<vmem>>, vector<1x8x384xf32>,
    return
  }
  func.func @transform_0(%arg0: i32, %arg1: i32) -> (i32, i32, i32) {
    %c0_i32 = arith.constant 0 : i32
    %c0_i32_0 = arith.constant 0 : i32
    %c0_i32_1 = arith.constant 0 : i32
    return %arg0, %c0_i32, %c0_i32_0 : i32, i32, i32
  }
  func.func @transform_1(%arg0: i32, %arg1: i32) -> (i32, i32) {
    %c0_i32 = arith.constant 0 : i32
    %c0_i32_0 = arith.constant 0 : i32
    return %arg1, %c0_i32 : i32, i32
  }
  func.func @transform_2(%arg0: i32, %arg1: i32) -> (i32, i32) {
    %c0_i32 = arith.constant 0 : i32
    %c0_i32_0 = arith.constant 0 : i32
    return %arg1, %c0_i32 : i32, i32
  }
  func.func @transform_3(%arg0: i32, %arg1: i32) -> (i32, i32, i32) {
    %c0_i32 = arith.constant 0 : i32
    %c0_i32_0 = arith.constant 0 : i32
    return %arg0, %arg1, %c0_i32 : i32, i32, i32
  }
}

</mosaic_0001>

<bundles_post_ra>
// kernel: conv2_forward.1
= control target key start
LH: loop header
LB: loop body
LE: loop exit
PB: predicated region body
PF: predicated region fallthrough
CT: control target
= control target key end

     0   :  { %8 = vsyncpa [#allocation3], 0  ;;  %s1166_s0 = inlined_call_operand.hbm [shape: bf16[2,8,456], index: 0, kind: input, shape index: {}]   ;;  %s1167_s1 = inlined_call_operand.hbm [shape: bf16[8,72], index: 1, kind: input, shape index: {}]   ;;  %s1168_s2 = inlined_call_operand.hbm [shape: f32[8,1], index: 2, kind: input, shape index: {}]   ;;  %s1169_s3 = inlined_call_operand.hbm [shape: f32[2,8,384], index: 3, kind: output, shape index: {}]  }
   0x1   :  { %9 = vsyncpa [#allocation6], 0 }
   0x2   :  { %10 = vsyncpa [#allocation4], 0  ;;  %s933_s12 = smov [#allocation5]   ;;  %s934_s14 = smov [#allocation2]  }
   0x3   :  { %s29_s13 = sshll.u32 %s933_s12, 4  ;;  %s16_s15 = sshll.u32 %s934_s14, 4  ;;  %s30_s13 = int_to_ptr.vmem [resolvable:$true] %s29_s13  ;;  %s972_s15 = int_to_ptr.vmem [resolvable:$true] %s16_s15 }
   0x4   :  { %s839_s18 = scalar_lea.hbm %s1167_s1, 64 }
   0x5   :  { %p840_p0 = scmp.ne.s32.totalorder %s1167_s1, %s839_s18  ;;  %p843_p1 = scmp.lt.u32.totalorder %s839_s18, %s1167_s1 }
   0x7   :  { %p845_p2 = pnand %p843_p1, %p840_p0 }
   0x9   :  { %848 = shalt.err (!%p845_p2)
}
   0xa   :  { %s849_s23 = scalar_lea.vmem %s30_s13, 64  ;;  %p854_p4 = scmp.lt.s32.totalorder %s30_s13, %s30_s13 }
   0xb   :  { %p850_p3 = scmp.ne.s32.totalorder %s30_s13, %s849_s23  ;;  %p855_p5 = scmp.lt.s32.totalorder %s849_s23, %s849_s23 }
   0xd   :  { %p856_p6 = por %p855_p5, %p854_p4 }
   0xf   :  { %p857_p7 = pnand %p856_p6, %p850_p3 }
  0x11   :  { %860 = shalt.err (!%p857_p7)
}
  0x12   :  { %32 = dma.hbm_to_vmem [thread:$0]  %s1167_s1, 64, %s30_s13, [#allocation6]  }
  0x13   :  { %s861_s28 = scalar_lea.hbm %s1166_s0, 512 }
  0x14   :  { %p862_p8 = scmp.ne.s32.totalorder %s1166_s0, %s861_s28  ;;  %p865_p9 = scmp.lt.u32.totalorder %s861_s28, %s1166_s0 }
  0x16   :  { %p867_p10 = pnand %p865_p9, %p862_p8 }
  0x18   :  { %870 = shalt.err (!%p867_p10)
}
  0x19   :  { %s871_s6 = scalar_lea.vmem %s972_s15, 512  ;;  %p876_p12 = scmp.lt.s32.totalorder %s972_s15, %s972_s15 }
  0x1a   :  { %p872_p11 = scmp.ne.s32.totalorder %s972_s15, %s871_s6  ;;  %p877_p13 = scmp.lt.s32.totalorder %s871_s6, %s871_s6 }
  0x1c   :  { %p878_p0 = por %p877_p13, %p876_p12 }
  0x1e   :  { %p879_p1 = pnand %p878_p0, %p872_p11 }
  0x20   :  { %882 = shalt.err (!%p879_p1)
}
  0x21   :  { %s935_s1 = smov 256   ;;  %s936_s7 = smov 16  }
  0x22   :  { %22 = dma.hbm_to_vmem [thread:$0]  %s1166_s0, 512, %s972_s15, [#allocation3], %s935_s1, %s935_s1, %s936_s7  }
  0x23   :  { %s937_s10 = smov [#allocation7]   ;;  %s883_s14 = scalar_lea.hbm %s1168_s2, 128 }
  0x24   :  { %s39_s11 = sshll.u32 %s937_s10, 4  ;;  %p884_p2 = scmp.ne.s32.totalorder %s1168_s2, %s883_s14  ;;  %s40_s11 = int_to_ptr.vmem [resolvable:$true] %s39_s11 }
  0x25   :  { %p887_p3 = scmp.lt.u32.totalorder %s883_s14, %s1168_s2 }
  0x27   :  { %p889_p4 = pnand %p887_p3, %p884_p2 }
  0x29   :  { %892 = shalt.err (!%p889_p4)
}
  0x2a   :  { %s893_s20 = scalar_lea.vmem %s40_s11, 128  ;;  %p898_p6 = scmp.lt.s32.totalorder %s40_s11, %s40_s11 }
  0x2b   :  { %p894_p5 = scmp.ne.s32.totalorder %s40_s11, %s893_s20  ;;  %p899_p7 = scmp.lt.s32.totalorder %s893_s20, %s893_s20 }
  0x2d   :  { %p900_p8 = por %p899_p7, %p898_p6 }
  0x2f   :  { %p901_p9 = pnand %p900_p8, %p894_p5 }
  0x31   :  { %904 = shalt.err (!%p901_p9)
}
  0x32   :  { %42 = dma.hbm_to_vmem [thread:$0]  %s1168_s2, 128, %s40_s11, [#allocation6]  }
  0x33   :  { %927 = dma.done.wait [#allocation3], 512  }
  0x34   :  { %928 = vsyncadd [#allocation3], 4294966784 }
  0x35   :  { %929 = dma.done.wait [#allocation6], 192  }
  0x36   :  { %930 = vsyncadd [#allocation6], 4294967104  ;;  %v55_v0 = vld [vmem:[#allocation2] sm:$0xff]  ;;  %v56_v1 = vld [vmem:[#allocation2 + $0x8] sm:$0xff]  ;;  %v938_v2 = vmov 0.0   ;;  %s939_s2 = smov 126  }
  0x37   :  { %607 = vmatprep.subr.bf16.mxu1 %v938_v2  ;;  %v1016_v3 = vunpack.c.h.bf16 %v55_v0  ;;  %v1018_v4 = vunpack.c.l.bf16 %v56_v1  ;;  %v1020_v5 = vunpack.c.l.bf16 %v55_v0  ;;  %v60_v6 = vunpack.c.h.bf16 %v56_v1  ;;  %s940_s21 = smov 127   ;;  %s941_s22 = smov 104   ;;  %v322_v9 = vld [vmem:[#allocation2 + $0x10] sm:$0xff]  ;;  %v323_v10 = vld [vmem:[#allocation2 + $0x18] sm:$0xff]  ;;  %v54_v22 = vld [vmem:[#allocation7] sm:$0xff] }
  0x38   :  { %s942_s23 = smov 102   ;;  %s943_s24 = smov 103   ;;  %v1037_v11 = vunpack.c.l.bf16 %v322_v9  ;;  %v1039_v12 = vunpack.c.l.bf16 %v323_v10  ;;  %v327_v15 = vunpack.c.h.bf16 %v323_v10  ;;  %v1046_v16 = vunpack.c.h.bf16 %v322_v9 }
  0x39   :  { %v664_v7 = vpack.i.bf16 %v1018_v4, %v1016_v3  ;;  %v659_v8 = vpack.i.bf16 %v60_v6, %v1020_v5  ;;  %s944_s25 = smov 79   ;;  %s945_s26 = smov 80   ;;  %v729_v13 = vpack.i.bf16 %v60_v6, %v1018_v4  ;;  %v724_v14 = vpack.i.bf16 %v1016_v3, %v1020_v5 }
  0x3a   :  { %v946_v17 = vmov 0   ;;  %vm947_vm0 = vmmov 0   ;;  %s948_s27 = smov 78   ;;  %v739_v18 = vpack.i.bf16 %v327_v15, %v1037_v11  ;;  %v734_v19 = vpack.i.bf16 %v1039_v12, %v1046_v16  ;;  %s949_s28 = smov [#allocation8]  }
  0x3b   :  { %665 = vrot.lane.b32.xlu1 %v664_v7, %s939_s2  ;;  %655 = vrot.lane.b32.xlu0 %v664_v7, %s940_s21  ;;  %v809_v20 = vpack.i.bf16 %v327_v15, %v1039_v12  ;;  %v804_v21 = vpack.i.bf16 %v1046_v16, %v1037_v11  ;;  %vm73_vm1 = vcmask 1039360   ;;  %vm88_vm2 = vcmask 1031168   ;;  %s576_s29 = sshll.u32 %s949_s28, 4  ;;  %s577_s29 = int_to_ptr.vmem [resolvable:$true] %s576_s29 }
  0x3c   :  { %251 = vmatprep.mubr.bf16.mxu0 %v946_v17  ;;  %617 = vmatprep.mubr.msk.bf16.mxu1 %vm947_vm0, %v938_v2  ;;  %vm103_vm3 = vcmask 850944   ;;  %vm118_vm4 = vcmask 842752   ;;  %vm133_vm5 = vcmask 834560   ;;  %vm148_vm6 = vcmask 654336   ;;  %s905_s30 = scalar_lea.vmem %s577_s29, 768  ;;  %p910_p11 = scmp.lt.s32.totalorder %s577_s29, %s577_s29 }
  0x3d   :  { %814 = vset.pattern.permute.xlu0 %v946_v17  ;;  %vm163_vm7 = vcmask 646144   ;;  %vm178_vm8 = vcmask 637952   ;;  %vm209_vm9 = vcmask 1043456   ;;  %vm205_vm10 = vcmask 588800   ;;  %p906_p10 = scmp.ne.s32.totalorder %s577_s29, %s905_s30  ;;  %p911_p12 = scmp.lt.s32.totalorder %s905_s30, %s905_s30 }
  0x3f   :  { %670 = vrot.lane.b32.xlu1 %v664_v7, %s941_s22  ;;  %660 = vrot.lane.b32.xlu0 %v659_v8, %s940_s21  ;;  %p912_p13 = por %p911_p12, %p910_p11 }
  0x41   :  { %p913_p0 = pnand %p912_p13, %p906_p10 }
  0x43   :  { %680 = vrot.lane.b32.xlu1 %v659_v8, %s941_s22  ;;  %675 = vrot.lane.b32.xlu0 %v659_v8, %s939_s2 }
  0x47   :  { %690 = vrot.lane.b32.xlu1 %v664_v7, %s942_s23  ;;  %685 = vrot.lane.b32.xlu0 %v664_v7, %s943_s24 }
  0x4b   :  { %700 = vrot.lane.b32.xlu1 %v659_v8, %s942_s23  ;;  %695 = vrot.lane.b32.xlu0 %v659_v8, %s943_s24 }
  0x4f   :  { %710 = vrot.lane.b32.xlu1 %v664_v7, %s944_s25  ;;  %705 = vrot.lane.b32.xlu0 %v664_v7, %s945_s26 }
  0x53   :  { %720 = vrot.lane.b32.xlu1 %v659_v8, %s944_s25  ;;  %715 = vrot.lane.b32.xlu0 %v659_v8, %s945_s26 }
  0x57   :  { %730 = vrot.lane.b32.xlu1 %v729_v13, %s948_s27  ;;  %725 = vrot.lane.b32.xlu0 %v724_v14, %s948_s27 }
  0x5b   :  { %740 = vrot.lane.b32.xlu1 %v739_v18, %s940_s21  ;;  %735 = vrot.lane.b32.xlu0 %v734_v19, %s940_s21 }
  0x5f   :  { %750 = vrot.lane.b32.xlu1 %v734_v19, %s941_s22  ;;  %745 = vrot.lane.b32.xlu0 %v734_v19, %s939_s2 }
  0x63   :  { %760 = vrot.lane.b32.xlu1 %v739_v18, %s941_s22  ;;  %755 = vrot.lane.b32.xlu0 %v739_v18, %s939_s2 }
  0x67   :  { %770 = vrot.lane.b32.xlu1 %v734_v19, %s942_s23  ;;  %765 = vrot.lane.b32.xlu0 %v734_v19, %s943_s24 }
  0x6b   :  { %780 = vrot.lane.b32.xlu1 %v739_v18, %s942_s23  ;;  %775 = vrot.lane.b32.xlu0 %v739_v18, %s943_s24 }
  0x6f   :  { %790 = vrot.lane.b32.xlu1 %v734_v19, %s944_s25  ;;  %785 = vrot.lane.b32.xlu0 %v734_v19, %s945_s26 }
  0x73   :  { %800 = vrot.lane.b32.xlu1 %v739_v18, %s944_s25  ;;  %795 = vrot.lane.b32.xlu0 %v739_v18, %s945_s26 }
  0x77   :  { %810 = vrot.lane.b32.xlu1 %v809_v20, %s948_s27  ;;  %805 = vrot.lane.b32.xlu0 %v804_v21, %s948_s27 }
  0x7b   :  { %202 = vperm.xlu0 %814, %v54_v22  }
  0xad   :  { %v666_v23 = vpop.permute.xlu1 %665  ;;  %v656_v24 = vpop.permute.xlu0 %655 }
  0xae   :  { %v658_v25 = vunpack.i.h.bf16 %v656_v24  ;;  %v657_v26 = vunpack.i.l.bf16 %v656_v24  ;;  %v668_v27 = vunpack.i.h.bf16 %v666_v23  ;;  %v667_v28 = vunpack.i.l.bf16 %v666_v23 }
  0xb0   :  { %v75_v29 = vsel %vm73_vm1, %v657_v26, %v658_v25  ;;  %v90_v39 = vsel %vm88_vm2, %v667_v28, %v668_v27 }
  0xb1   :  { %v671_v30 = vpop.permute.xlu1 %670  ;;  %v661_v31 = vpop.permute.xlu0 %660  ;;  %v186_v32 = vpack.c.bf16 %v75_v29, %v1016_v3 }
  0xb2   :  { %v673_v33 = vunpack.i.h.bf16 %v671_v30  ;;  %v672_v34 = vunpack.i.l.bf16 %v671_v30  ;;  %v663_v35 = vunpack.i.h.bf16 %v661_v31  ;;  %v662_v36 = vunpack.i.l.bf16 %v661_v31 }
  0xb3   :  { %219 = vmatprep.subr.bf16.mxu0 %v186_v32 }
  0xb4   :  { %v74_v37 = vsel %vm73_vm1, %v662_v36, %v657_v26  ;;  %v76_v38 = vsel %vm73_vm1, %v658_v25, %v663_v35  ;;  %v105_v40 = vsel %vm103_vm3, %v672_v34, %v673_v33 }
  0xb5   :  { %v681_v41 = vpop.permute.xlu1 %680  ;;  %v676_v42 = vpop.permute.xlu0 %675  ;;  %v185_v43 = vpack.c.bf16 %v74_v37, %v1020_v5  ;;  %v187_v44 = vpack.c.bf16 %v76_v38, %v1018_v4  ;;  %v189_v45 = vpack.c.bf16 %v105_v40, %v90_v39 }
  0xb6   :  { %v683_v46 = vunpack.i.h.bf16 %v681_v41  ;;  %v682_v47 = vunpack.i.l.bf16 %v681_v41  ;;  %v678_v48 = vunpack.i.h.bf16 %v676_v42  ;;  %v677_v49 = vunpack.i.l.bf16 %v676_v42 }
  0xb7   :  { %220 = vmatpush1.bf16.msra.mxu0 %v185_v43  ;;  %608 = vmatpush3.bf16.msra.mxu1 %v187_v44 }
  0xb8   :  { %221 = vmatprep.subr.bf16.mxu0 %v189_v45  ;;  %609 = vmatprep.subr.bf16.mxu1 %v938_v2  ;;  %v89_v50 = vsel %vm88_vm2, %v677_v49, %v667_v28  ;;  %v104_v51 = vsel %vm103_vm3, %v682_v47, %v672_v34  ;;  %v91_v52 = vsel %vm88_vm2, %v668_v27, %v678_v48 }
  0xb9   :  { %v691_v53 = vpop.permute.xlu1 %690  ;;  %v686_v54 = vpop.permute.xlu0 %685  ;;  %v188_v55 = vpack.c.bf16 %v104_v51, %v89_v50  ;;  %v106_v56 = vsel %vm103_vm3, %v673_v33, %v683_v46 }
  0xba   :  { %v693_v57 = vunpack.i.h.bf16 %v691_v53  ;;  %v692_v58 = vunpack.i.l.bf16 %v691_v53  ;;  %v688_v59 = vunpack.i.h.bf16 %v686_v54  ;;  %v687_v60 = vunpack.i.l.bf16 %v686_v54 }
  0xbb   :  { %222 = vmatpush1.bf16.msra.mxu0 %v188_v55  ;;  %v190_v61 = vpack.c.bf16 %v106_v56, %v91_v52 }
  0xbc   :  { %v120_v62 = vsel %vm118_vm4, %v687_v60, %v688_v59  ;;  %v135_v63 = vsel %vm133_vm5, %v692_v58, %v693_v57 }
  0xbd   :  { %610 = vmatpush3.bf16.msra.mxu1 %v190_v61  ;;  %v701_v0 = vpop.permute.xlu1 %700  ;;  %v696_v1 = vpop.permute.xlu0 %695  ;;  %v192_v3 = vpack.c.bf16 %v135_v63, %v120_v62  ;;  %v1108_v61 = vld [vmem:[#allocation5] sm:$0xf] }
  0xbe   :  { %v703_v4 = vunpack.i.h.bf16 %v701_v0  ;;  %v702_v5 = vunpack.i.l.bf16 %v701_v0  ;;  %v698_v6 = vunpack.i.h.bf16 %v696_v1  ;;  %v697_v7 = vunpack.i.l.bf16 %v696_v1  ;;  %611 = vmatprep.subr.bf16.mxu1 %v938_v2 }
  0xbf   :  { %223 = vmatprep.subr.bf16.mxu0 %v192_v3 }
  0xc0   :  { %v119_v8 = vsel %vm118_vm4, %v697_v7, %v687_v60  ;;  %v134_v9 = vsel %vm133_vm5, %v702_v5, %v692_v58  ;;  %v121_v10 = vsel %vm118_vm4, %v688_v59, %v698_v6  ;;  %v136_v13 = vsel %vm133_vm5, %v693_v57, %v703_v4 }
  0xc1   :  { %v711_v14 = vpop.permute.xlu1 %710  ;;  %v706_v15 = vpop.permute.xlu0 %705  ;;  %v191_v18 = vpack.c.bf16 %v134_v9, %v119_v8  ;;  %v193_v19 = vpack.c.bf16 %v136_v13, %v121_v10 }
  0xc2   :  { %v713_v20 = vunpack.i.h.bf16 %v711_v14  ;;  %v712_v21 = vunpack.i.l.bf16 %v711_v14  ;;  %v708_v22 = vunpack.i.h.bf16 %v706_v15  ;;  %v707_v23 = vunpack.i.l.bf16 %v706_v15 }
  0xc3   :  { %224 = vmatpush1.bf16.msra.mxu0 %v191_v18  ;;  %612 = vmatpush3.bf16.msra.mxu1 %v193_v19 }
  0xc4   :  { %v150_v24 = vsel %vm148_vm6, %v707_v23, %v708_v22  ;;  %v165_v25 = vsel %vm163_vm7, %v712_v21, %v713_v20  ;;  %613 = vmatprep.subr.bf16.mxu1 %v938_v2 }
  0xc5   :  { %v721_v26 = vpop.permute.xlu1 %720  ;;  %v716_v27 = vpop.permute.xlu0 %715  ;;  %v195_v28 = vpack.c.bf16 %v165_v25, %v150_v24 }
  0xc6   :  { %v723_v29 = vunpack.i.h.bf16 %v721_v26  ;;  %v722_v30 = vunpack.i.l.bf16 %v721_v26  ;;  %v718_v31 = vunpack.i.h.bf16 %v716_v27  ;;  %v717_v32 = vunpack.i.l.bf16 %v716_v27 }
  0xc7   :  { %225 = vmatprep.subr.bf16.mxu0 %v195_v28 }
  0xc8   :  { %v149_v33 = vsel %vm148_vm6, %v717_v32, %v707_v23  ;;  %v164_v34 = vsel %vm163_vm7, %v722_v30, %v712_v21  ;;  %v151_v35 = vsel %vm148_vm6, %v708_v22, %v718_v31  ;;  %v166_v36 = vsel %vm163_vm7, %v713_v20, %v723_v29 }
  0xc9   :  { %v731_v37 = vpop.permute.xlu1 %730  ;;  %v726_v38 = vpop.permute.xlu0 %725  ;;  %v194_v39 = vpack.c.bf16 %v164_v34, %v149_v33  ;;  %v196_v40 = vpack.c.bf16 %v166_v36, %v151_v35 }
  0xca   :  { %v733_v41 = vunpack.i.h.bf16 %v731_v37  ;;  %v732_v42 = vunpack.i.l.bf16 %v731_v37  ;;  %v728_v43 = vunpack.i.h.bf16 %v726_v38  ;;  %v727_v44 = vunpack.i.l.bf16 %v726_v38 }
  0xcb   :  { %226 = vmatpush1.bf16.msra.mxu0 %v194_v39  ;;  %614 = vmatpush3.bf16.msra.mxu1 %v196_v40 }
  0xcc   :  { %v180_v45 = vsel %vm178_vm8, %v728_v43, %v732_v42  ;;  %615 = vmatprep.subr.bf16.mxu1 %v938_v2  ;;  %v179_v46 = vsel %vm178_vm8, %v727_v44, %v728_v43  ;;  %v181_v47 = vsel %vm178_vm8, %v732_v42, %v733_v41 }
  0xcd   :  { %v198_v48 = vpack.c.bf16 %v180_v45, %v180_v45  ;;  %v741_v49 = vpop.permute.xlu1 %740  ;;  %v736_v50 = vpop.permute.xlu0 %735  ;;  %v197_v51 = vpack.c.bf16 %v179_v46, %v179_v46  ;;  %v199_v52 = vpack.c.bf16 %v181_v47, %v181_v47 }
  0xce   :  { %v743_v53 = vunpack.i.h.bf16 %v741_v49  ;;  %v742_v54 = vunpack.i.l.bf16 %v741_v49  ;;  %v738_v55 = vunpack.i.h.bf16 %v736_v50  ;;  %v737_v56 = vunpack.i.l.bf16 %v736_v50 }
  0xcf   :  { %589 = vmatprep.subr.msk.bf16.mxu0 %vm209_vm9, %v198_v48  ;;  %v211_v57 = vsel %vm209_vm9, %v197_v51, 0  ;;  %v217_v58 = vsel %vm209_vm9, %v199_v52, 0 }
  0xd0   :  { %v342_v59 = vsel %vm73_vm1, %v738_v55, %v743_v53  ;;  %v340_v60 = vsel %vm73_vm1, %v742_v54, %v737_v56  ;;  %228 = vmatpush1.bf16.msra.mxu0 %v211_v57  ;;  %616 = vmatpush3.bf16.msra.mxu1 %v217_v58  ;;  %v341_v62 = vsel %vm73_vm1, %v737_v56, %v738_v55 }
  0xd1   :  { %v446_v63 = vpack.c.bf16 %v342_v59, %v1039_v12  ;;  %v444_v0 = vpack.c.bf16 %v340_v60, %v1037_v11  ;;  %v751_v1 = vpop.permute.xlu1 %750  ;;  %v746_v3 = vpop.permute.xlu0 %745  ;;  %v445_v4 = vpack.c.bf16 %v341_v62, %v1046_v16  ;;  %621 = vmatprep.subr.bf16.mxu1 %v938_v2 }
  0xd2   :  { %v753_v5 = vunpack.i.h.bf16 %v751_v1  ;;  %v752_v6 = vunpack.i.l.bf16 %v751_v1  ;;  %v748_v7 = vunpack.i.h.bf16 %v746_v3  ;;  %v747_v8 = vunpack.i.l.bf16 %v746_v3 }
  0xd3   :  { %590 = vmatmul.mubr.msk.bf16.vlgmr.msra.gmra.mrb[0].mxu0 %vm205_vm10, %v1108_v61  ;;  %618 = vmatmul.mubr.msk.bf16.vlgmr.msra.gmra.mrb[0].mxu1 %vm205_vm10, %v1108_v61 }
  0xd4   :  { %468 = vmatprep.subr.bf16.mxu0 %v445_v4  ;;  %622 = vmatpush3.bf16.msra.mxu1 %v446_v63  ;;  %v355_v11 = vsel %vm88_vm2, %v747_v8, %v748_v7  ;;  %v369_v12 = vsel %vm103_vm3, %v752_v6, %v753_v5 }
  0xd5   :  { %469 = vmatpush1.bf16.msra.mxu0 %v444_v0  ;;  %v761_v16 = vpop.permute.xlu1 %760  ;;  %v756_v9 = vpop.permute.xlu0 %755  ;;  %v448_v10 = vpack.c.bf16 %v369_v12, %v355_v11  ;;  %623 = vmatprep.subr.bf16.mxu1 %v938_v2 }
  0xd6   :  { %v763_v13 = vunpack.i.h.bf16 %v761_v16  ;;  %v762_v14 = vunpack.i.l.bf16 %v761_v16  ;;  %v758_v15 = vunpack.i.h.bf16 %v756_v9  ;;  %v757_v18 = vunpack.i.l.bf16 %v756_v9  ;;  %500 = vmatprep.mubr.bf16.mxu0 %v946_v17  ;;  %631 = vmatprep.mubr.msk.bf16.mxu1 %vm947_vm0, %v938_v2 }
  0xd7   :  { %470 = vmatprep.subr.bf16.mxu0 %v448_v10 }
  0xd8   :  { %v368_v19 = vsel %vm103_vm3, %v762_v14, %v752_v6  ;;  %v370_v20 = vsel %vm103_vm3, %v753_v5, %v763_v13  ;;  %v354_v21 = vsel %vm88_vm2, %v757_v18, %v747_v8  ;;  %v356_v22 = vsel %vm88_vm2, %v748_v7, %v758_v15 }
  0xd9   :  { %v447_v23 = vpack.c.bf16 %v368_v19, %v354_v21  ;;  %v449_v24 = vpack.c.bf16 %v370_v20, %v356_v22  ;;  %v771_v25 = vpop.permute.xlu1 %770  ;;  %v766_v26 = vpop.permute.xlu0 %765 }
  0xda   :  { %v773_v27 = vunpack.i.h.bf16 %v771_v25  ;;  %v772_v28 = vunpack.i.l.bf16 %v771_v25  ;;  %v768_v29 = vunpack.i.h.bf16 %v766_v26  ;;  %v767_v17 = vunpack.i.l.bf16 %v766_v26 }
  0xdb   :  { %471 = vmatpush1.bf16.msra.mxu0 %v447_v23  ;;  %624 = vmatpush3.bf16.msra.mxu1 %v449_v24 }
  0xdc   :  { %v383_v30 = vsel %vm118_vm4, %v767_v17, %v768_v29  ;;  %v397_v31 = vsel %vm133_vm5, %v772_v28, %v773_v27  ;;  %625 = vmatprep.subr.bf16.mxu1 %v938_v2 }
  0xdd   :  { %v781_v32 = vpop.permute.xlu1 %780  ;;  %v776_v33 = vpop.permute.xlu0 %775  ;;  %v451_v34 = vpack.c.bf16 %v397_v31, %v383_v30 }
  0xde   :  { %v783_v35 = vunpack.i.h.bf16 %v781_v32  ;;  %v782_v36 = vunpack.i.l.bf16 %v781_v32  ;;  %v778_v37 = vunpack.i.h.bf16 %v776_v33  ;;  %v777_v38 = vunpack.i.l.bf16 %v776_v33 }
  0xdf   :  { %472 = vmatprep.subr.bf16.mxu0 %v451_v34 }
  0xe0   :  { %v396_v39 = vsel %vm133_vm5, %v782_v36, %v772_v28  ;;  %v398_v40 = vsel %vm133_vm5, %v773_v27, %v783_v35  ;;  %v382_v41 = vsel %vm118_vm4, %v777_v38, %v767_v17  ;;  %v384_v42 = vsel %vm118_vm4, %v768_v29, %v778_v37 }
  0xe1   :  { %v450_v43 = vpack.c.bf16 %v396_v39, %v382_v41  ;;  %v452_v44 = vpack.c.bf16 %v398_v40, %v384_v42  ;;  %v791_v45 = vpop.permute.xlu1 %790  ;;  %v786_v46 = vpop.permute.xlu0 %785 }
  0xe2   :  { %v793_v47 = vunpack.i.h.bf16 %v791_v45  ;;  %v792_v48 = vunpack.i.l.bf16 %v791_v45  ;;  %v788_v49 = vunpack.i.h.bf16 %v786_v46  ;;  %v787_v50 = vunpack.i.l.bf16 %v786_v46 }
  0xe3   :  { %473 = vmatpush1.bf16.msra.mxu0 %v450_v43  ;;  %626 = vmatpush3.bf16.msra.mxu1 %v452_v44 }
  0xe4   :  { %v411_v51 = vsel %vm148_vm6, %v787_v50, %v788_v49  ;;  %v425_v52 = vsel %vm163_vm7, %v792_v48, %v793_v47  ;;  %627 = vmatprep.subr.bf16.mxu1 %v938_v2 }
  0xe5   :  { %v801_v53 = vpop.permute.xlu1 %800  ;;  %v796_v54 = vpop.permute.xlu0 %795  ;;  %v454_v55 = vpack.c.bf16 %v425_v52, %v411_v51 }
  0xe6   :  { %v803_v56 = vunpack.i.h.bf16 %v801_v53  ;;  %v802_v57 = vunpack.i.l.bf16 %v801_v53  ;;  %v798_v58 = vunpack.i.h.bf16 %v796_v54  ;;  %v797_v59 = vunpack.i.l.bf16 %v796_v54 }
  0xe7   :  { %474 = vmatprep.subr.bf16.mxu0 %v454_v55 }
  0xe8   :  { %v424_v60 = vsel %vm163_vm7, %v802_v57, %v792_v48  ;;  %v426_v62 = vsel %vm163_vm7, %v793_v47, %v803_v56  ;;  %v410_v63 = vsel %vm148_vm6, %v797_v59, %v787_v50  ;;  %v412_v0 = vsel %vm148_vm6, %v788_v49, %v798_v58 }
  0xe9   :  { %v453_v1 = vpack.c.bf16 %v424_v60, %v410_v63  ;;  %v455_v3 = vpack.c.bf16 %v426_v62, %v412_v0  ;;  %v811_v4 = vpop.permute.xlu1 %810  ;;  %v806_v5 = vpop.permute.xlu0 %805 }
  0xea   :  { %v813_v6 = vunpack.i.h.bf16 %v811_v4  ;;  %v812_v7 = vunpack.i.l.bf16 %v811_v4  ;;  %v808_v8 = vunpack.i.h.bf16 %v806_v5  ;;  %v807_v11 = vunpack.i.l.bf16 %v806_v5 }
  0xeb   :  { %475 = vmatpush1.bf16.msra.mxu0 %v453_v1  ;;  %628 = vmatpush3.bf16.msra.mxu1 %v455_v3 }
  0xec   :  { %v440_v12 = vsel %vm178_vm8, %v812_v7, %v813_v6  ;;  %v439_v16 = vsel %vm178_vm8, %v808_v8, %v812_v7  ;;  %629 = vmatprep.subr.bf16.mxu1 %v938_v2  ;;  %v438_v9 = vsel %vm178_vm8, %v807_v11, %v808_v8 }
  0xed   :  { %v458_v10 = vpack.c.bf16 %v440_v12, %v440_v12  ;;  %v457_v13 = vpack.c.bf16 %v439_v16, %v439_v16  ;;  %v456_v14 = vpack.c.bf16 %v438_v9, %v438_v9 }
  0xef   :  { %592 = vmatprep.subr.msk.bf16.mxu0 %vm209_vm9, %v457_v13  ;;  %v460_v15 = vsel %vm209_vm9, %v456_v14, 0  ;;  %v466_v18 = vsel %vm209_vm9, %v458_v10, 0 }
  0xf0   :  { %477 = vmatpush1.bf16.msra.mxu0 %v460_v15  ;;  %630 = vmatpush3.bf16.msra.mxu1 %v466_v18 }
  0xf3   :  { %593 = vmatmul.mubr.msk.bf16.vlgmr.msra.gmra.mrb[4].mxu0 %vm205_vm10, %v1108_v61  ;;  %632 = vmatmul.mubr.msk.bf16.vlgmr.msra.gmra.mrb[4].mxu1 %vm205_vm10, %v1108_v61 }
  0xfa   :  { %v203_v2 = vpop.permute.xlu0 %202 }
 0x1a6   :  { %v253_v19 = vpop.f32.mrb[0].mxu0  ;;  %v294_v20 = vpop.f32.mrb[0].mxu1 }
 0x1a7   :  { %v254_v21 = vadd.f32 %v253_v19, %v203_v2  ;;  %v295_v22 = vadd.f32 %v294_v20, %v203_v2  ;;  %v255_v23 = vpop.f32.mrb[1].mxu0  ;;  %v619_v24 = vpop.f32.mrb[1].mxu1 }
 0x1a8   :  { %v256_v25 = vadd.f32 %v255_v23, %v203_v2  ;;  %v257_v26 = vpop.f32.mrb[2].mxu0  ;;  %v297_v27 = vpop.f32.mrb[2].mxu1 }
 0x1a9   :  { %v300_v28 = vsub.f32 0.0, %v254_v21  ;;  %v302_v29 = vsub.f32 0.0, %v295_v22  ;;  %v258_v17 = vpop.f32.mrb[3].mxu0  ;;  %v620_v30 = vpop.f32.mrb[3].mxu1 }
 0x1aa   :  { %v301_v31 = vsub.f32 0.0, %v256_v25 }
 0x1ab   :  { %v303_v32 = vmul.f32 1.442695, %v300_v28  ;;  %v307_v33 = vmul.f32 1.442695, %v302_v29 }
 0x1ac   :  { %v305_v34 = vmul.f32 1.442695, %v301_v31 }
 0x1ad   :  { %815 = vpow2.f32 %v303_v32 }
 0x1ae   :  { %817 = vpow2.f32 %v307_v33 }
 0x1af   :  { %819 = vpow2.f32 %v305_v34 }
 0x1b7   :  { %v816_v61 = vpop.eup %815 }
 0x1b8   :  { %v818_v35 = vpop.eup %817  ;;  %v309_v36 = vadd.f32 1.0, %v816_v61 }
 0x1b9   :  { %v820_v37 = vpop.eup %819  ;;  %v311_v38 = vadd.f32 1.0, %v818_v35 }
 0x1ba   :  { %821 = vrcp.f32 %v309_v36  ;;  %v310_v39 = vadd.f32 1.0, %v820_v37 }
 0x1bb   :  { %823 = vrcp.f32 %v311_v38 }
 0x1bc   :  { %825 = vrcp.f32 %v310_v39 }
 0x1c4   :  { %v822_v40 = vpop.eup %821 }
 0x1c5   :  { %v824_v41 = vpop.eup %823  ;;  %v315_v42 = vmul.f32 %v822_v40, %v254_v21 }
 0x1c6   :  { %v826_v43 = vpop.eup %825  ;;  %v317_v44 = vmul.f32 %v824_v41, %v295_v22  ;;  %v502_v45 = vpop.f32.mrb[4].mxu0 }
 0x1c7   :  { %v543_v46 = vpop.f32.mrb[4].mxu1  ;;  %318 = vst [vmem:[#allocation8] sm:$0xff] %v315_v42  ;;  %v316_v47 = vmul.f32 %v826_v43, %v256_v25  ;;  %v503_v48 = vadd.f32 %v502_v45, %v203_v2  ;;  %v504_v50 = vpop.f32.mrb[5].mxu0 }
 0x1c8   :  { %v544_v49 = vadd.f32 %v543_v46, %v203_v2  ;;  %v633_v51 = vpop.f32.mrb[5].mxu1  ;;  %320 = vst [vmem:[#allocation8 + $0x10] sm:$0xff] %v317_v44  ;;  %v505_v52 = vadd.f32 %v504_v50, %v203_v2  ;;  %v506_v53 = vpop.f32.mrb[6].mxu0 }
 0x1c9   :  { %v546_v54 = vpop.f32.mrb[6].mxu1  ;;  %319 = vst [vmem:[#allocation8 + $0x8] sm:$0xff] %v316_v47  ;;  %v549_v55 = vsub.f32 0.0, %v503_v48  ;;  %v507_v57 = vpop.f32.mrb[7].mxu0 }
 0x1ca   :  { %v551_v56 = vsub.f32 0.0, %v544_v49  ;;  %v634_v58 = vpop.f32.mrb[7].mxu1  ;;  %v550_v59 = vsub.f32 0.0, %v505_v52 }
 0x1cb   :  { %v552_v60 = vmul.f32 1.442695, %v549_v55 }
 0x1cc   :  { %v556_v62 = vmul.f32 1.442695, %v551_v56  ;;  %v554_v63 = vmul.f32 1.442695, %v550_v59 }
 0x1cd   :  { %827 = vpow2.f32 %v552_v60 }
 0x1ce   :  { %829 = vpow2.f32 %v556_v62 }
 0x1cf   :  { %831 = vpow2.f32 %v554_v63 }
 0x1d7   :  { %v828_v0 = vpop.eup %827 }
 0x1d8   :  { %v830_v1 = vpop.eup %829  ;;  %v558_v3 = vadd.f32 1.0, %v828_v0 }
 0x1d9   :  { %v832_v4 = vpop.eup %831  ;;  %v560_v5 = vadd.f32 1.0, %v830_v1 }
 0x1da   :  { %833 = vrcp.f32 %v558_v3  ;;  %v559_v6 = vadd.f32 1.0, %v832_v4 }
 0x1db   :  { %835 = vrcp.f32 %v560_v5 }
 0x1dc   :  { %837 = vrcp.f32 %v559_v6 }
 0x1e4   :  { %v834_v7 = vpop.eup %833 }
 0x1e5   :  { %v836_v8 = vpop.eup %835  ;;  %v564_v11 = vmul.f32 %v834_v7, %v503_v48 }
 0x1e6   :  { %v838_v12 = vpop.eup %837  ;;  %v566_v16 = vmul.f32 %v836_v8, %v544_v49 }
 0x1e7   :  { %568 = vst [vmem:[#allocation8 + $0x18] sm:$0xff] %v564_v11  ;;  %v565_v9 = vmul.f32 %v838_v12, %v505_v52 }
 0x1e8   :  { %570 = vst [vmem:[#allocation8 + $0x28] sm:$0xff] %v566_v16 }
 0x1e9   :  { %569 = vst [vmem:[#allocation8 + $0x20] sm:$0xff] %v565_v9 }
 0x1ea   :  { %916 = shalt.err (!%p913_p0)
}
 0x1eb   :  { %s917_s6 = scalar_lea.hbm %s1169_s3, 768 }
 0x1ec   :  { %p918_p1 = scmp.ne.s32.totalorder %s1169_s3, %s917_s6  ;;  %p921_p2 = scmp.lt.u32.totalorder %s917_s6, %s1169_s3 }
 0x1ee   :  { %p923_p3 = pnand %p921_p2, %p918_p1 }
 0x1f0   :  { %926 = shalt.err (!%p923_p3)
}
 0x1f1   :  { %s950_s10 = smov 384   ;;  %s951_s11 = smov 24  }
 0x1f2   :  { %582 = dma.vmem_to_hbm [thread:$0]  %s577_s29, 768, %s1169_s3, [#allocation4], %s950_s10, %s950_s10, %s951_s11  }
 0x1f3   :  { %931 = dma.done.wait [#allocation4], 768  }
 0x1f4   :  { %932 = vsyncadd [#allocation4], 4294966528 }
 0x1f5   :  { %586 = vsyncpa [#allocation3], 1 }
 0x1f6   :  { %587 = vsyncpa [#allocation6], 1 }
 0x1f7   :  { %588 = vsyncpa [#allocation4], 1 }

</bundles_post_ra>
